<compile_context>
chip_gen: v6e
topology: v6e:2x2x1
jax: 0.10.0
libtpu: 0.0.40
codegen_flags: <defaults>
</compile_context>

<pallas_src>
import functools

import jax
import jax.numpy as jnp
from jax import lax
from jax.experimental import pallas as pl
from jax.experimental.pallas import tpu as pltpu


def _group_layout(C, C_out, f):
    """Trace-time decomposition of the pixel-unshuffle group structure.

    Returns:
      per_channel:   {c: [(co, fh, lo, hi), ...]}  -- input rows (c, fh) feeding
                     output channel co with source columns wo*f + fw, fw in [lo, hi).
      ranges_per_co: {co: [(lo, hi), ...]}         -- distinct fw-ranges used by co.
    """
    G = C * f * f // C_out
    per_channel = {c: [] for c in range(C)}
    ranges_per_co = {co: [] for co in range(C_out)}
    for co in range(C_out):
        start, end = co * G, (co + 1) * G
        r0, r1 = start // f, (end - 1) // f
        for r in range(r0, r1 + 1):
            lo = max(start, r * f) - r * f
            hi = min(end, (r + 1) * f) - r * f
            c, fh = divmod(r, f)
            per_channel[c].append((co, fh, lo, hi))
            if (lo, hi) not in ranges_per_co[co]:
                ranges_per_co[co].append((lo, hi))
    return per_channel, ranges_per_co


def _make_kernel(C, C_out, f, W, Wo, per_channel, ranges_per_co):
    G = C * f * f // C_out
    inv_g = 1.0 / G
    distinct_ranges = sorted({rng for rngs in ranges_per_co.values() for rng in rngs})

    def kernel(x_ref, o_ref):
        # x_ref: (1, C, TH, f*W)    o_ref: (1, C_out, TH, Wo)
        # Constant pooling matrices: pool[w, wo] = 1/G iff wo*f + lo <= w < wo*f + hi.
        w_ids = lax.broadcasted_iota(jnp.int32, (W, Wo), 0)
        wo_ids = lax.broadcasted_iota(jnp.int32, (W, Wo), 1)
        pools = {}
        for (lo, hi) in distinct_ranges:
            sel = (w_ids >= wo_ids * f + lo) & (w_ids < wo_ids * f + hi)
            pools[(lo, hi)] = jnp.where(sel, inv_g, 0.0).astype(jnp.float32)

        # Group reduction: accumulate (TH, W) slabs per (co, fw-range) with VPU adds.
        acc = {}
        for c in range(C):
            rows = per_channel[c]
            if not rows:
                continue
            slab = x_ref[0, c, :, :].astype(jnp.float32)        # (TH, f*W)
            for (co, fh, lo, hi) in rows:
                part = slab[:, fh * W:(fh + 1) * W]             # (TH, W), static slice
                key = (co, (lo, hi))
                acc[key] = part if key not in acc else acc[key] + part

        # Horizontal pooling W -> Wo (MXU, contraction over W) and store per channel.
        for co in range(C_out):
            total = None
            for rng in ranges_per_co[co]:
                contrib = jnp.dot(acc[(co, rng)], pools[rng],
                                  preferred_element_type=jnp.float32)
                total = contrib if total is None else total + contrib
            o_ref[0, co, :, :] = total.astype(o_ref.dtype)

    return kernel


def _pick_tile_rows(Ho, C, f, W, itemsize, max_block_bytes=6 * 1024 * 1024):
    """Largest row-tile TH (TH | Ho, TH % 8 == 0 or TH == Ho) fitting the VMEM budget."""
    if Ho <= 8:
        return Ho
    bytes_per_out_row = C * f * W * itemsize
    cap = max(1, max_block_bytes // bytes_per_out_row)
    if cap >= Ho:
        return Ho
    mult8 = [d for d in range(8, Ho + 1, 8) if Ho % d == 0]
    if not mult8:
        return Ho
    fitting = [d for d in mult8 if d <= cap]
    return max(fitting) if fitting else min(mult8)


@functools.partial(jax.jit, static_argnames=("out_channels", "factor"))
def pixel_unshuffle_channel_avg_downsample(x, *, out_channels: int, factor: int):
    """Equivalent of PixelUnshuffleChannelAveragingDownSampleLayer.forward.

    x: (B, C_in, H, W)  ->  (B, out_channels, H // factor, W // factor)
    """
    B, C, H, W = x.shape
    f = factor
    assert H % f == 0 and W % f == 0
    assert C * f * f % out_channels == 0
    Ho, Wo = H // f, W // f

    per_channel, ranges_per_co = _group_layout(C, out_channels, f)

    # FREE reshape (contiguous split/merge of trailing dims) -- no HBM copy.
    xr = x.reshape(B, C, Ho, f * W)

    TH = _pick_tile_rows(Ho, C, f, W, x.dtype.itemsize)
    grid = (B, Ho // TH)

    kernel = _make_kernel(C, out_channels, f, W, Wo, per_channel, ranges_per_co)

    return pl.pallas_call(
        kernel,
        out_shape=jax.ShapeDtypeStruct((B, out_channels, Ho, Wo), x.dtype),
        grid=grid,
        in_specs=[pl.BlockSpec((1, C, TH, f * W), lambda b, t: (b, 0, t, 0))],
        out_specs=pl.BlockSpec((1, out_channels, TH, Wo), lambda b, t: (b, 0, t, 0)),
        compiler_params=pltpu.CompilerParams(
            dimension_semantics=("parallel", "parallel")),
    )(xr)


def _reference(x, out_channels, factor):
    B, C, H, W = x.shape
    f = factor
    Ho, Wo = H // f, W // f
    g = C * f * f // out_channels
    xu = x.reshape(B, C, Ho, f, Wo, f)
    xu = jnp.transpose(xu, (0, 1, 3, 5, 2, 4)).reshape(B, C * f * f, Ho, Wo)
    return xu.reshape(B, out_channels, g, Ho, Wo).mean(axis=2)


if __name__ == "__main__":
    # Module config: in_channels=4, out_channels=8, factor=2  ->  group_size = 2
    in_channels, out_channels, factor = 4, 8, 2
    key = jax.random.PRNGKey(0)
    x = jax.random.normal(key, (2, in_channels, 16, 16), dtype=jnp.float32)

    out = pixel_unshuffle_channel_avg_downsample(
        x, out_channels=out_channels, factor=factor)
    out = jax.block_until_ready(out)

    ref = _reference(x, out_channels, factor)
    assert out.shape == (2, out_channels, 8, 8)
    err = float(jnp.max(jnp.abs(out - ref)))
    assert jnp.allclose(out, ref, atol=1e-5, rtol=1e-5), f"max abs err {err}"

    print("KERNEL_OK")
</pallas_src>

<mosaic_0001>
module attributes {stable_mosaic.version = 11 : i64} {
  func.func @kernel(%arg0: i32, %arg1: i32, %arg2: memref<1x4x8x32xf32, #tpu.memory_space<vmem>>, %arg3: memref<1x8x8x8xf32, #tpu.memory_space<vmem>>) attributes {dimension_semantics = [#tpu.dimension_semantics<parallel>, #tpu.dimension_semantics<parallel>], iteration_bounds = array<i64: 2, 1>, scalar_prefetch = 0 : i64, scratch_operands = 0 : i64, tpu.core_type = #tpu.core_type<tc>, window_params = [{transform_indices = @transform_0, window_bounds = array<i64: 1, 4, 8, 32>}, {transform_indices = @transform_1, window_bounds = array<i64: 1, 8, 8, 8>}]} {
    %0 = tpu.iota {dimensions = array<i32: 0>} : vector<16x8xi32>
    %1 = tpu.iota {dimensions = array<i32: 1>} : vector<16x8xi32>
    %c2_i32 = arith.constant 2 : i32
    %2 = vector.broadcast %c2_i32 : i32 to vector<16x8xi32>
    %3 = arith.muli %1, %2 : vector<16x8xi32>
    %c0_i32 = arith.constant 0 : i32
    %4 = vector.broadcast %c0_i32 : i32 to vector<16x8xi32>
    %5 = arith.addi %3, %4 : vector<16x8xi32>
    %6 = arith.cmpi sge, %0, %5 : vector<16x8xi32>
    %c2_i32_0 = arith.constant 2 : i32
    %7 = vector.broadcast %c2_i32_0 : i32 to vector<16x8xi32>
    %8 = arith.muli %1, %7 : vector<16x8xi32>
    %c2_i32_1 = arith.constant 2 : i32
    %9 = vector.broadcast %c2_i32_1 : i32 to vector<16x8xi32>
    %10 = arith.addi %8, %9 : vector<16x8xi32>
    %11 = arith.cmpi slt, %0, %10 : vector<16x8xi32>
    %12 = arith.andi %6, %11 : vector<16x8xi1>
    %cst = arith.constant 5.000000e-01 : f32
    %cst_2 = arith.constant 0.000000e+00 : f32
    %13 = vector.broadcast %cst : f32 to vector<16x8xf32>
    %14 = vector.broadcast %cst_2 : f32 to vector<16x8xf32>
    %15 = arith.select %12, %13, %14 : vector<16x8xi1>, vector<16x8xf32>
    %c0 = arith.constant 0 : index
    %c0_3 = arith.constant 0 : index
    %c0_4 = arith.constant 0 : index
    %c0_5 = arith.constant 0 : index
    %16 = vector.load %arg2[%c0, %c0_3, %c0_4, %c0_5] : memref<1x4x8x32xf32, #tpu.memory_space<vmem>>, vector<1x1x8x32xf32>
    %17 = vector.shape_cast %16 : vector<1x1x8x32xf32> to vector<8x32xf32>
    %18 = vector.extract_strided_slice %17 {offsets = [0, 0], sizes = [8, 16], strides = [1, 1]} : vector<8x32xf32> to vector<8x16xf32>
    %19 = vector.extract_strided_slice %17 {offsets = [0, 16], sizes = [8, 16], strides = [1, 1]} : vector<8x32xf32> to vector<8x16xf32>
    %c0_6 = arith.constant 0 : index
    %c1 = arith.constant 1 : index
    %c0_7 = arith.constant 0 : index
    %c0_8 = arith.constant 0 : index
    %20 = vector.load %arg2[%c0_6, %c1, %c0_7, %c0_8] : memref<1x4x8x32xf32, #tpu.memory_space<vmem>>, vector<1x1x8x32xf32>
    %21 = vector.shape_cast %20 : vector<1x1x8x32xf32> to vector<8x32xf32>
    %22 = vector.extract_strided_slice %21 {offsets = [0, 0], sizes = [8, 16], strides = [1, 1]} : vector<8x32xf32> to vector<8x16xf32>
    %23 = vector.extract_strided_slice %21 {offsets = [0, 16], sizes = [8, 16], strides = [1, 1]} : vector<8x32xf32> to vector<8x16xf32>
    %c0_9 = arith.constant 0 : index
    %c2 = arith.constant 2 : index
    %c0_10 = arith.constant 0 : index
    %c0_11 = arith.constant 0 : index
    %24 = vector.load %arg2[%c0_9, %c2, %c0_10, %c0_11] : memref<1x4x8x32xf32, #tpu.memory_space<vmem>>, vector<1x1x8x32xf32>
    %25 = vector.shape_cast %24 : vector<1x1x8x32xf32> to vector<8x32xf32>
    %26 = vector.extract_strided_slice %25 {offsets = [0, 0], sizes = [8, 16], strides = [1, 1]} : vector<8x32xf32> to vector<8x16xf32>
    %27 = vector.extract_strided_slice %25 {offsets = [0, 16], sizes = [8, 16], strides = [1, 1]} : vector<8x32xf32> to vector<8x16xf32>
    %c0_12 = arith.constant 0 : index
    %c3 = arith.constant 3 : index
    %c0_13 = arith.constant 0 : index
    %c0_14 = arith.constant 0 : index
    %28 = vector.load %arg2[%c0_12, %c3, %c0_13, %c0_14] : memref<1x4x8x32xf32, #tpu.memory_space<vmem>>, vector<1x1x8x32xf32>
    %29 = vector.shape_cast %28 : vector<1x1x8x32xf32> to vector<8x32xf32>
    %30 = vector.extract_strided_slice %29 {offsets = [0, 0], sizes = [8, 16], strides = [1, 1]} : vector<8x32xf32> to vector<8x16xf32>
    %31 = vector.extract_strided_slice %29 {offsets = [0, 16], sizes = [8, 16], strides = [1, 1]} : vector<8x32xf32> to vector<8x16xf32>
    %cst_15 = arith.constant dense<0.000000e+00> : vector<8x8xf32>
    %32 = tpu.matmul %18, %15, %cst_15 {dimension_numbers = #tpu.dot_dimension_numbers<[1], [0], [0], [1], [0, 0, 1, 1], [], []>} : vector<8x16xf32>, vector<16x8xf32>, vector<8x8xf32> -> vector<8x8xf32>
    %c0_16 = arith.constant 0 : index
    %c0_17 = arith.constant 0 : index
    %c0_18 = arith.constant 0 : index
    %c0_19 = arith.constant 0 : index
    %33 = vector.load %arg3[%c0_16, %c0_17, %c0_18, %c0_19] : memref<1x8x8x8xf32, #tpu.memory_space<vmem>>, vector<1x1x8x8xf32>
    %34 = vector.shape_cast %33 : vector<1x1x8x8xf32> to vector<8x8xf32>
    %35 = vector.shape_cast %32 : vector<8x8xf32> to vector<1x1x8x8xf32>
    tpu.vector_store %arg3[%c0_16, %c0_17, %c0_18, %c0_19], %35 {strides = array<i32>} : memref<1x8x8x8xf32, #tpu.memory_space<vmem>>, vector<1x1x8x8xf32>,
    %cst_20 = arith.constant dense<0.000000e+00> : vector<8x8xf32>
    %36 = tpu.matmul %19, %15, %cst_20 {dimension_numbers = #tpu.dot_dimension_numbers<[1], [0], [0], [1], [0, 0, 1, 1], [], []>} : vector<8x16xf32>, vector<16x8xf32>, vector<8x8xf32> -> vector<8x8xf32>
    %c0_21 = arith.constant 0 : index
    %c1_22 = arith.constant 1 : index
    %c0_23 = arith.constant 0 : index
    %c0_24 = arith.constant 0 : index
    %37 = vector.load %arg3[%c0_21, %c1_22, %c0_23, %c0_24] : memref<1x8x8x8xf32, #tpu.memory_space<vmem>>, vector<1x1x8x8xf32>
    %38 = vector.shape_cast %37 : vector<1x1x8x8xf32> to vector<8x8xf32>
    %39 = vector.shape_cast %36 : vector<8x8xf32> to vector<1x1x8x8xf32>
    tpu.vector_store %arg3[%c0_21, %c1_22, %c0_23, %c0_24], %39 {strides = array<i32>} : memref<1x8x8x8xf32, #tpu.memory_space<vmem>>, vector<1x1x8x8xf32>,
    %cst_25 = arith.constant dense<0.000000e+00> : vector<8x8xf32>
    %40 = tpu.matmul %22, %15, %cst_25 {dimension_numbers = #tpu.dot_dimension_numbers<[1], [0], [0], [1], [0, 0, 1, 1], [], []>} : vector<8x16xf32>, vector<16x8xf32>, vector<8x8xf32> -> vector<8x8xf32>
    %c0_26 = arith.constant 0 : index
    %c2_27 = arith.constant 2 : index
    %c0_28 = arith.constant 0 : index
    %c0_29 = arith.constant 0 : index
    %41 = vector.load %arg3[%c0_26, %c2_27, %c0_28, %c0_29] : memref<1x8x8x8xf32, #tpu.memory_space<vmem>>, vector<1x1x8x8xf32>
    %42 = vector.shape_cast %41 : vector<1x1x8x8xf32> to vector<8x8xf32>
    %43 = vector.shape_cast %40 : vector<8x8xf32> to vector<1x1x8x8xf32>
    tpu.vector_store %arg3[%c0_26, %c2_27, %c0_28, %c0_29], %43 {strides = array<i32>} : memref<1x8x8x8xf32, #tpu.memory_space<vmem>>, vector<1x1x8x8xf32>,
    %cst_30 = arith.constant dense<0.000000e+00> : vector<8x8xf32>
    %44 = tpu.matmul %23, %15, %cst_30 {dimension_numbers = #tpu.dot_dimension_numbers<[1], [0], [0], [1], [0, 0, 1, 1], [], []>} : vector<8x16xf32>, vector<16x8xf32>, vector<8x8xf32> -> vector<8x8xf32>
    %c0_31 = arith.constant 0 : index
    %c3_32 = arith.constant 3 : index
    %c0_33 = arith.constant 0 : index
    %c0_34 = arith.constant 0 : index
    %45 = vector.load %arg3[%c0_31, %c3_32, %c0_33, %c0_34] : memref<1x8x8x8xf32, #tpu.memory_space<vmem>>, vector<1x1x8x8xf32>
    %46 = vector.shape_cast %45 : vector<1x1x8x8xf32> to vector<8x8xf32>
    %47 = vector.shape_cast %44 : vector<8x8xf32> to vector<1x1x8x8xf32>
    tpu.vector_store %arg3[%c0_31, %c3_32, %c0_33, %c0_34], %47 {strides = array<i32>} : memref<1x8x8x8xf32, #tpu.memory_space<vmem>>, vector<1x1x8x8xf32>,
    %cst_35 = arith.constant dense<0.000000e+00> : vector<8x8xf32>
    %48 = tpu.matmul %26, %15, %cst_35 {dimension_numbers = #tpu.dot_dimension_numbers<[1], [0], [0], [1], [0, 0, 1, 1], [], []>} : vector<8x16xf32>, vector<16x8xf32>, vector<8x8xf32> -> vector<8x8xf32>
    %c0_36 = arith.constant 0 : index
    %c4 = arith.constant 4 : index
    %c0_37 = arith.constant 0 : index
    %c0_38 = arith.constant 0 : index
    %49 = vector.load %arg3[%c0_36, %c4, %c0_37, %c0_38] : memref<1x8x8x8xf32, #tpu.memory_space<vmem>>, vector<1x1x8x8xf32>
    %50 = vector.shape_cast %49 : vector<1x1x8x8xf32> to vector<8x8xf32>
    %51 = vector.shape_cast %48 : vector<8x8xf32> to vector<1x1x8x8xf32>
    tpu.vector_store %arg3[%c0_36, %c4, %c0_37, %c0_38], %51 {strides = array<i32>} : memref<1x8x8x8xf32, #tpu.memory_space<vmem>>, vector<1x1x8x8xf32>,
    %cst_39 = arith.constant dense<0.000000e+00> : vector<8x8xf32>
    %52 = tpu.matmul %27, %15, %cst_39 {dimension_numbers = #tpu.dot_dimension_numbers<[1], [0], [0], [1], [0, 0, 1, 1], [], []>} : vector<8x16xf32>, vector<16x8xf32>, vector<8x8xf32> -> vector<8x8xf32>
    %c0_40 = arith.constant 0 : index
    %c5 = arith.constant 5 : index
    %c0_41 = arith.constant 0 : index
    %c0_42 = arith.constant 0 : index
    %53 = vector.load %arg3[%c0_40, %c5, %c0_41, %c0_42] : memref<1x8x8x8xf32, #tpu.memory_space<vmem>>, vector<1x1x8x8xf32>
    %54 = vector.shape_cast %53 : vector<1x1x8x8xf32> to vector<8x8xf32>
    %55 = vector.shape_cast %52 : vector<8x8xf32> to vector<1x1x8x8xf32>
    tpu.vector_store %arg3[%c0_40, %c5, %c0_41, %c0_42], %55 {strides = array<i32>} : memref<1x8x8x8xf32, #tpu.memory_space<vmem>>, vector<1x1x8x8xf32>,
    %cst_43 = arith.constant dense<0.000000e+00> : vector<8x8xf32>
    %56 = tpu.matmul %30, %15, %cst_43 {dimension_numbers = #tpu.dot_dimension_numbers<[1], [0], [0], [1], [0, 0, 1, 1], [], []>} : vector<8x16xf32>, vector<16x8xf32>, vector<8x8xf32> -> vector<8x8xf32>
    %c0_44 = arith.constant 0 : index
    %c6 = arith.constant 6 : index
    %c0_45 = arith.constant 0 : index
    %c0_46 = arith.constant 0 : index
    %57 = vector.load %arg3[%c0_44, %c6, %c0_45, %c0_46] : memref<1x8x8x8xf32, #tpu.memory_space<vmem>>, vector<1x1x8x8xf32>
    %58 = vector.shape_cast %57 : vector<1x1x8x8xf32> to vector<8x8xf32>
    %59 = vector.shape_cast %56 : vector<8x8xf32> to vector<1x1x8x8xf32>
    tpu.vector_store %arg3[%c0_44, %c6, %c0_45, %c0_46], %59 {strides = array<i32>} : memref<1x8x8x8xf32, #tpu.memory_space<vmem>>, vector<1x1x8x8xf32>,
    %cst_47 = arith.constant dense<0.000000e+00> : vector<8x8xf32>
    %60 = tpu.matmul %31, %15, %cst_47 {dimension_numbers = #tpu.dot_dimension_numbers<[1], [0], [0], [1], [0, 0, 1, 1], [], []>} : vector<8x16xf32>, vector<16x8xf32>, vector<8x8xf32> -> vector<8x8xf32>
    %c0_48 = arith.constant 0 : index
    %c7 = arith.constant 7 : index
    %c0_49 = arith.constant 0 : index
    %c0_50 = arith.constant 0 : index
    %61 = vector.load %arg3[%c0_48, %c7, %c0_49, %c0_50] : memref<1x8x8x8xf32, #tpu.memory_space<vmem>>, vector<1x1x8x8xf32>
    %62 = vector.shape_cast %61 : vector<1x1x8x8xf32> to vector<8x8xf32>
    %63 = vector.shape_cast %60 : vector<8x8xf32> to vector<1x1x8x8xf32>
    tpu.vector_store %arg3[%c0_48, %c7, %c0_49, %c0_50], %63 {strides = array<i32>} : memref<1x8x8x8xf32, #tpu.memory_space<vmem>>, vector<1x1x8x8xf32>,
    return
  }
  func.func @transform_0(%arg0: i32, %arg1: i32) -> (i32, i32, i32, i32) {
    %c0_i32 = arith.constant 0 : i32
    %c0_i32_0 = arith.constant 0 : i32
    %c0_i32_1 = arith.constant 0 : i32
    return %arg0, %c0_i32, %arg1, %c0_i32_0 : i32, i32, i32, i32
  }
  func.func @transform_1(%arg0: i32, %arg1: i32) -> (i32, i32, i32, i32) {
    %c0_i32 = arith.constant 0 : i32
    %c0_i32_0 = arith.constant 0 : i32
    %c0_i32_1 = arith.constant 0 : i32
    return %arg0, %c0_i32, %arg1, %c0_i32_0 : i32, i32, i32, i32
  }
}

</mosaic_0001>

<bundles_post_ra>
// kernel: pixel_unshuffle_channel_avg_downsample.1
= control target key start
LH: loop header
LB: loop body
LE: loop exit
PB: predicated region body
PF: predicated region fallthrough
CT: control target
= control target key end

     0   :  { %6 = vsyncpa [#allocation3], 0  ;;  %s1351_s0 = inlined_call_operand.vmem [shape: f32[2,4,8,32], index: 0, kind: input, shape index: {}]   ;;  %s1352_s1 = inlined_call_operand.hbm [shape: f32[2,8,8,8], index: 1, kind: output, shape index: {}]  }
   0x1   :  { %8 = vsyncpa [#allocation3 + $0x1], 0  ;;  %s1145_s6 = smov 0   ;;  %s1147_s7 = smov 0  }
   0x2   :  { %s1149_s8 = smov 0   ;;  %s1151_s9 = smov 0  }
   0x3   :  { %s1153_s10 = smov 0   ;;  %s1155_s11 = smov 0  }
   0x4 LB: > { %s860_s12 = sadd.s32 4294967295, %s1126_s11   ;;  %s861_s13 = sadd.s32 4294967294, %s1126_s11   ;;  %s1126_s11 = sphi %s1155_s11, %s14_s11   ;;  %s1122_s10 = sphi %s1153_s10, %s1363_s10   ;;  %s1118_s9 = sphi %s1151_s9, %s1362_s9   ;;  %s1114_s8 = sphi %s1149_s8, %s1361_s8   ;;  %s1110_s7 = sphi %s1147_s7, %s1360_s7   ;;  %s1106_s6 = sphi %s1145_s6, %s1359_s6  }
   0x5   : > { %s26_s14 = sadd.s32 1, %s1122_s10  ;;  %s63_s15 = sadd.s32 1, %s1114_s8 }
   0x6   : > { %p28_p0 = scmp.ge.s32.totalorder %s26_s14, 2  ;;  %p73_p1 = scmp.ne.s32.totalorder %s1114_s8, %s1110_s7 }
   0x7   : > { %p74_p2 = scmp.eq.s32.totalorder %s860_s12, 1  ;;  %p79_p3 = scmp.ne.s32.totalorder %s1110_s7, %s1106_s6 }
   0x8   : > { %s1365_s14 = smov (%p28_p0, %s26_s14), 0  ;;  %p80_p5 = scmp.eq.s32.totalorder %s861_s13, 1 }
   0x9   : > { %p1185_p4 = por %p74_p2, %p73_p1  ;;  %s58_s17 = ssub.s32 %s1122_s10, %s1365_s14 }
   0xa   : > { %p864_p6 = scmp.ge.s32.totalorder %s1126_s11, 1  ;;  %p61_p7 = scmp.eq.s32.totalorder %s58_s17, 0 }
   0xb   : > { %p1192_p8 = por %p80_p5, %p79_p3  ;;  %p109_p9 = scmp.lt.s32.totalorder %s1126_s11, 3 }
   0xc   : > { %s1198_s19 = scalar_select %p61_p7, %s1114_s8, %s63_s15  }
   0xd   : > { %p110_p10 = pnand %p864_p6, %p109_p9 }
   0xe   : > { %p132_p11 = scmp.lt.s32.totalorder (!%p110_p10), %s1118_s9, 1  ;;  %s1130_s25 = smov (!%p110_p10), 112  }
   0xf   : > { %113 = sbr.rel (%p110_p10) target bundleno = 360 (0x168), region = 24  ;;  %s129_s26 = sand.u32 (!%p110_p10), 1, %s1110_s7  }
  0x10   : > { %s865_s27 = sshll.u32 (!%p110_p10), %s129_s26, 6  ;;  %s908_s29 = sshll.u32 (!%p110_p10), %s1118_s9, 10 }
  0x11   : > { %s131_s28 = scalar_lea.vmem (!%p110_p10), [#allocation2], %s865_s27  ;;  %s1299_s4 = scalar_lea.hbm (!%p110_p10), %s1352_s1, %s908_s29 }
  0x12   : > { %s782_s30 = sshll.u32 (!%p110_p10), %s131_s28, 4  ;;  %s1306_s5 = scalar_lea.sflag (!%p110_p10), [#allocation3], %s129_s26  ;;  %s1301_s30 = int_to_ptr.vmem [resolvable:$true] %s782_s30 }
  0x13   : > { %s1132_s12 = smov (!%p110_p10), [#allocation2]  }
  0x14   : > { %v140_v0 = vlaneseq  ;;  %v1128_v1 = vmov 0.0   ;;  %s133_s20 = scalar_select %p132_p11, %s1118_s9, 1  ;;  %vm1129_vm0 = vmmov 0   ;;  %v1131_v12 = vmov 0.5  }
  0x15   : > { %933 = vmatprep.subr.mxu0 %v1128_v1  ;;  %940 = vmatprep.subr.mxu1 %v1128_v1  ;;  %vm162_vm7 = vcmask 130048   ;;  %vm236_vm8 = vcmask 64512   ;;  %s1050_s9 = scalar_lea.vmem %s1301_s30, 1024  ;;  %s1054_s13 = sshll.u32 %s1132_s12, 4  ;;  %s1055_s13 = int_to_ptr.vmem [resolvable:$false] %s1054_s13 }
  0x16   : > { %v141_v2 = vshrl.u32 %v140_v0, 7  ;;  %v144_v3 = vand.u32 127, %v140_v0  ;;  %937 = vmatprep.mubr.msk.f32.mxu0 %vm1129_vm0, %v1128_v1  ;;  %944 = vmatprep.mubr.msk.f32.mxu1 %vm1129_vm0, %v1128_v1  ;;  %s907_s21 = sshll.u32 %s133_s20, 5  ;;  %p1051_p12 = scmp.ne.s32.totalorder %s1301_s30, %s1050_s9 }
  0x17   : > { %s139_s24 = scalar_lea.vmem %s1351_s0, %s907_s21  ;;  %s1056_s15 = scalar_lea.vmem %s1055_s13, 2048 }
  0x18   : > { %v142_v4 = vadd.s32 8, %v141_v2  ;;  %v145_v5 = vmul.u32 2, %v144_v3  ;;  %v155_v6 = vld [vmem:[%s139_s24] sm:$0xff]  ;;  %v869_v7 = vld [vmem:[%s139_s24 + $0x10] sm:$0xff]  ;;  %v868_v9 = vld [vmem:[%s139_s24 + $0x8] sm:$0xff]  ;;  %p1052_p13 = pnand %p1051_p12, %p1185_p4  ;;  %p1057_p1 = scmp.lt.s32.totalorder %s1301_s30, %s1055_s13 }
  0x19   : > { %238 = vrot.lane.b32.xlu0 %v155_v6, %s1130_s25  ;;  %540 = vrot.lane.b32.xlu1 %v869_v7, %s1130_s25  ;;  %v870_v10 = vld [vmem:[%s139_s24 + $0x18] sm:$0xff]  ;;  %p1058_p2 = scmp.lt.s32.totalorder %s1056_s15, %s1050_s9 }
  0x1a   : > { %vm147_vm1 = vcmp.ge.s32.totalorder %v142_v4, %v145_v5  ;;  %v148_v8 = vadd.s32 2, %v145_v5  ;;  %vm146_vm2 = vcmp.ge.s32.totalorder %v141_v2, %v145_v5  ;;  %p1053_p0 = pneg %p1052_p13 }
  0x1b   : > { %p1059_p3 = por %p1058_p2, %p1057_p1 }
  0x1c   : > { %vm150_vm3 = vcmp.lt.s32.totalorder %v142_v4, %v148_v8  ;;  %vm149_vm4 = vcmp.lt.s32.totalorder %v141_v2, %v148_v8 }
  0x1d   : > { %vm1211_vm5 = vmand %vm147_vm1, %vm150_vm3  ;;  %389 = vrot.lane.b32.xlu0 %v868_v9, %s1130_s25  ;;  %691 = vrot.lane.b32.xlu1 %v870_v10, %s1130_s25  ;;  %p1060_p5 = pnand %p1059_p3, %p1053_p0 }
  0x1e   : > { %934 = vmatpush3.msk.msra.mxu0 %vm1211_vm5, %v1131_v12  ;;  %941 = vmatpush3.msk.msra.mxu1 %vm1211_vm5, %v1131_v12  ;;  %vm1219_vm6 = vmand %vm146_vm2, %vm149_vm4 }
  0x1f   : > { %935 = vmatprep.subr.mxu0 %v1128_v1  ;;  %942 = vmatprep.subr.mxu1 %v1128_v1 }
  0x20   : > { %936 = vmatpush3.msk.msra.mxu0 %vm1219_vm6, %v1131_v12  ;;  %943 = vmatpush3.msk.msra.mxu1 %vm1219_vm6, %v1131_v12 }
  0x21   : > { %938 = vmatmul.mubr.msk.f32.vlgmr.msra.gmra.mxu0 %vm162_vm7, %v155_v6  ;;  %947 = vmatprep.subr.mxu0 %v1128_v1 }
  0x22   : > { %954 = vmatprep.subr.mxu1 %v1128_v1  ;;  %948 = vmatpush3.msk.msra.mxu0 %vm1211_vm5, %v1131_v12 }
  0x23   : > { %949 = vmatprep.subr.mxu0 %v1128_v1  ;;  %951 = vmatprep.mubr.msk.f32.mxu0 %vm1129_vm0, %v1128_v1 }
  0x24   : > { %950 = vmatpush3.msk.msra.mxu0 %vm1219_vm6, %v1131_v12 }
  0x25   : > { %952 = vmatmul.mubr.msk.f32.vlgmr.msra.gmra.mxu0 %vm162_vm7, %v868_v9  ;;  %961 = vmatprep.subr.mxu0 %v1128_v1 }
  0x26   : > { %962 = vmatpush3.msk.msra.mxu0 %vm1211_vm5, %v1131_v12  ;;  %965 = vmatprep.mubr.msk.f32.mxu0 %vm1129_vm0, %v1128_v1 }
  0x27   : > { %963 = vmatprep.subr.mxu0 %v1128_v1 }
  0x28   : > { %964 = vmatpush3.msk.msra.mxu0 %vm1219_vm6, %v1131_v12 }
  0x29   : > { %966 = vmatmul.mubr.msk.f32.vlgmr.msra.gmra.mxu0 %vm162_vm7, %v869_v7  ;;  %975 = vmatprep.subr.mxu0 %v1128_v1 }
  0x2a   : > { %976 = vmatpush3.msk.msra.mxu0 %vm1211_vm5, %v1131_v12  ;;  %979 = vmatprep.mubr.msk.f32.mxu0 %vm1129_vm0, %v1128_v1 }
  0x2b   : > { %977 = vmatprep.subr.mxu0 %v1128_v1 }
  0x2c   : > { %978 = vmatpush3.msk.msra.mxu0 %vm1219_vm6, %v1131_v12 }
  0x2d   : > { %980 = vmatmul.mubr.msk.f32.vlgmr.msra.gmra.mxu0 %vm162_vm7, %v870_v10 }
  0x8b   : > { %v239_v14 = vpop.permute.xlu0 %238  ;;  %v541_v16 = vpop.permute.xlu1 %540 }
  0x8c   : > { %945 = vmatmul.mubr.msk.f32.vlgmr.msra.gmra.mxu1 %vm162_vm7, %v239_v14 }
  0x8d   : > { %955 = vmatpush3.msk.msra.mxu1 %vm1211_vm5, %v1131_v12  ;;  %958 = vmatprep.mubr.msk.f32.mxu1 %vm1129_vm0, %v1128_v1 }
  0x8e   : > { %956 = vmatprep.subr.mxu1 %v1128_v1 }
  0x8f   : > { %957 = vmatpush3.msk.msra.mxu1 %vm1219_vm6, %v1131_v12  ;;  %v390_v15 = vpop.permute.xlu0 %389  ;;  %v692_v17 = vpop.permute.xlu1 %691 }
  0x90   : > { %968 = vmatprep.subr.mxu1 %v1128_v1  ;;  %959 = vmatmul.mubr.msk.f32.vlgmr.msra.gmra.mxu1 %vm162_vm7, %v390_v15 }
  0x91   : > { %969 = vmatpush3.msk.msra.mxu1 %vm1211_vm5, %v1131_v12  ;;  %972 = vmatprep.mubr.msk.f32.mxu1 %vm1129_vm0, %v1128_v1 }
  0x92   : > { %970 = vmatprep.subr.mxu1 %v1128_v1 }
  0x93   : > { %971 = vmatpush3.msk.msra.mxu1 %vm1219_vm6, %v1131_v12 }
  0x94   : > { %982 = vmatprep.subr.mxu1 %v1128_v1  ;;  %973 = vmatmul.mubr.msk.f32.vlgmr.msra.gmra.mxu1 %vm162_vm7, %v541_v16 }
  0x95   : > { %983 = vmatpush3.msk.msra.mxu1 %vm1211_vm5, %v1131_v12  ;;  %986 = vmatprep.mubr.msk.f32.mxu1 %vm1129_vm0, %v1128_v1 }
  0x96   : > { %984 = vmatprep.subr.mxu1 %v1128_v1 }
  0x97   : > { %985 = vmatpush3.msk.msra.mxu1 %vm1219_vm6, %v1131_v12 }
  0x98   : > { %987 = vmatmul.mubr.msk.f32.vlgmr.msra.gmra.mxu1 %vm162_vm7, %v692_v17 }
  0xe1   : > { %v232_v18 = vpop.f32.mrf.mxu0 }
  0xe2   : > { %237 = vst.msk [vmem:[%s131_s28] sm:$0xff] %vm236_vm8, %v232_v18 }
  0xe3   : > { %v939_v19 = vpop.f32.mrf.mxu0 }
  0xe5   : > { %v383_v20 = vpop.f32.mrf.mxu0 }
  0xe6   : > { %881 = vst.msk [vmem:[%s131_s28 + $0x10] sm:$0xff] %vm236_vm8, %v383_v20 }
  0xe7   : > { %v953_v21 = vpop.f32.mrf.mxu0 }
  0xe9   : > { %v534_v22 = vpop.f32.mrf.mxu0 }
  0xea   : > { %889 = vst.msk [vmem:[%s131_s28 + $0x20] sm:$0xff] %vm236_vm8, %v534_v22 }
  0xeb   : > { %v967_v23 = vpop.f32.mrf.mxu0 }
  0xed   : > { %v685_v24 = vpop.f32.mrf.mxu0 }
  0xee   : > { %897 = vst.msk [vmem:[%s131_s28 + $0x30] sm:$0xff] %vm236_vm8, %v685_v24 }
  0xef   : > { %v981_v25 = vpop.f32.mrf.mxu0 }
 0x14c   : > { %v308_v26 = vpop.f32.mrf.mxu1 }
 0x14d   : > { %877 = vst.msk [vmem:[%s131_s28 + $0x8] sm:$0xff] %vm236_vm8, %v308_v26 }
 0x14e   : > { %v946_v27 = vpop.f32.mrf.mxu1 }
 0x150   : > { %v459_v28 = vpop.f32.mrf.mxu1 }
 0x151   : > { %885 = vst.msk [vmem:[%s131_s28 + $0x18] sm:$0xff] %vm236_vm8, %v459_v28 }
 0x152   : > { %v960_v29 = vpop.f32.mrf.mxu1 }
 0x154   : > { %v610_v30 = vpop.f32.mrf.mxu1 }
 0x155   : > { %893 = vst.msk [vmem:[%s131_s28 + $0x28] sm:$0xff] %vm236_vm8, %v610_v30 }
 0x156   : > { %v974_v31 = vpop.f32.mrf.mxu1 }
 0x158   : > { %v761_v32 = vpop.f32.mrf.mxu1 }
 0x159   : > { %901 = vst.msk [vmem:[%s131_s28 + $0x38] sm:$0xff] %vm236_vm8, %v761_v32 }
 0x15a   : > { %v988_v33 = vpop.f32.mrf.mxu1 }
 0x15b   : > { %1063 = shalt.err (!%p1060_p5)
}
 0x15c   : > { %s1064_s17 = scalar_lea.hbm %s1299_s4, 1024  ;;  %s1068_s22 = scalar_lea.hbm %s1352_s1, 2048 }
 0x15d   : > { %p1065_p6 = scmp.ne.s32.totalorder %s1299_s4, %s1064_s17  ;;  %p1069_p10 = scmp.lt.s32.totalorder %s1299_s4, %s1352_s1 }
 0x15e   : > { %p1070_p11 = scmp.lt.s32.totalorder %s1068_s22, %s1064_s17 }
 0x15f   : > { %p1066_p7 = pnand %p1065_p6, %p1185_p4 }
 0x160   : > { %p1071_p12 = por %p1070_p11, %p1069_p10 }
 0x161   : > { %p1067_p9 = pneg %p1066_p7 }
 0x163   : > { %p1072_p13 = pnand %p1071_p12, %p1067_p9 }
 0x165   : > { %1075 = shalt.err (!%p1072_p13)
}
 0x166   : > { %s1133_s25 = smov 128   ;;  %s1134_s26 = smov 8  }
 0x167   : > { %989 = dma.vmem_to_hbm [thread:$0]  (%p1185_p4), %s1301_s30, 1024, %s1299_s4, %s1306_s5, %s1133_s25, %s1133_s25, %s1134_s26  }
 0x168 PF: > { %p995_p0 = scmp.ge.s32.totalorder %s1126_s11, 2  ;;  %s797_s27 = sand.u32 1, %s1106_s6  }
 0x169   : > { %s798_s28 = scalar_lea.sflag [#allocation3], %s797_s27 }
 0x16a   : > { %p992_p1 = pnand %p995_p0, %p1192_p8 }
 0x16c   : > { %p993_p2 = pneg %p992_p1 }
 0x16e   : > { %1101 = dma.done.wait (%p993_p2), %s798_s28, 1024  }
 0x16f   : > { %1103 = vsyncadd (%p993_p2), %s798_s28, 4294966272  ;;  %s14_s11 = sadd.s32 1, %s1126_s11   ;;  %s1359_s6 = smov %s1110_s7 }
 0x170   : > { %p11_p3 = scmp.ge.s32.totalorder %s14_s11, 4   ;;  %s1360_s7 = smov %s1114_s8 }
 0x171   : > { %s1361_s8 = smov %s1198_s19  ;;  %s1362_s9 = smov %s1122_s10 }
 0x172   : > { %s1363_s10 = smov %s1365_s14  ;;  %13 = sbr.rel (!%p11_p3) target bundleno = 4 (0x4), region = 69 }
 0x177   :  { %803 = vsyncpa [#allocation3], 1 }
 0x178   :  { %805 = vsyncpa [#allocation3 + $0x1], 1 }

</bundles_post_ra>
